<compile_context>
chip_gen: v5e
topology: v5e:2x2
jax: 0.10.0
libtpu: 0.0.40
codegen_flags: <defaults>
</compile_context>

<pallas_src>
import jax
import jax.numpy as jnp
from jax.experimental import pallas as pl
from jax.experimental.pallas import tpu as pltpu


def _elu(v):
    # F.elu with alpha=1.0 (f32 elementwise chain; exp goes to the EUP slot).
    return jnp.where(v > 0, v, jnp.exp(v) - 1.0)


def _round_up(n, m):
    return ((n + m - 1) // m) * m


def adversary_discriminator_kernel(
    x_ref, z_ref, mask_ref,
    wix_ref, wiz_ref, bi_ref,
    wr0_ref, br0_ref,
    wr1_ref, br1_ref,
    wo_ref, bo_ref,
    out_ref,
):
    z = z_ref[...]            # (TILE_R, dim_latent) f32 -> exact 0.5*z**2 term
    mask = mask_ref[...]      # (TILE_R, 1) f32
    mm_dtype = wix_ref.dtype  # matmul operand dtype (bf16 default, f32 optional)

    # linear_i: x @ Wi_x + z @ Wi_z + bi   (two small-K MXU matmuls, f32 acc).
    net = (
        jnp.dot(x_ref[...], wix_ref[...], preferred_element_type=jnp.float32)
        + jnp.dot(z.astype(mm_dtype), wiz_ref[...], preferred_element_type=jnp.float32)
        + bi_ref[...]
    )
    # TODO(synk): dropout1 (p=0.2) is identity in eval mode; no RNG dropout applied.

    # Folded residual block 0: net = elu(net + net @ (Wd0 @ Wn0) + (bd0 @ Wn0 + bn0))
    net = _elu(
        net
        + jnp.dot(net.astype(mm_dtype), wr0_ref[...], preferred_element_type=jnp.float32)
        + br0_ref[...]
    )
    # Folded residual block 1
    net = _elu(
        net
        + jnp.dot(net.astype(mm_dtype), wr1_ref[...], preferred_element_type=jnp.float32)
        + br1_ref[...]
    )

    # linear_o
    net = jnp.dot(net.astype(mm_dtype), wo_ref[...], preferred_element_type=jnp.float32) + bo_ref[...]
    # TODO(synk): dropout2 (p=0.2) is identity in eval mode; no RNG dropout applied.

    out_ref[...] = (net + 0.5 * jnp.square(z)) * mask


def adversary_discriminator(x, z, mask_seq, params, *, tile_r=2048,
                            matmul_dtype=jnp.bfloat16):
    """x: (B, S, dim_emb) f32, z: (B, S, dim_latent) f32, mask_seq: (B, S+1) int/bool."""
    B, S, dim_emb = x.shape
    dim_latent = z.shape[-1]
    R = B * S

    (wi_x, wi_z, bi, wd0, bd0, wn0, bn0, wd1, bd1, wn1, bn1, wo, bo) = params

    # --- wrapper-side algebraic folds (exact up to f32 rounding) ---
    wr0 = wd0 @ wn0                                      # (128, 128)
    br0 = bd0 @ wn0 + bn0                                # (1, 128)
    wr1 = wd1 @ wn1
    br1 = bd1 @ wn1 + bn1

    # --- flatten activations (no concat: x/z streamed separately) ---
    x2 = x.reshape(R, dim_emb).astype(matmul_dtype)      # bf16 stream (half HBM bytes)
    z2 = z.reshape(R, dim_latent).astype(jnp.float32)    # f32 (matmul casts in-kernel)
    mask2 = mask_seq[:, :-1].astype(jnp.float32).reshape(R, 1)

    # --- adaptive row tiling: ~equal tiles, multiple of 16, minimal padding ---
    num_tiles = pl.cdiv(R, tile_r)
    tile_r = _round_up(pl.cdiv(R, num_tiles), 16)        # 16 keeps bf16 sublane packing happy
    r_pad = num_tiles * tile_r
    if r_pad != R:
        pad = r_pad - R
        x2 = jnp.pad(x2, ((0, pad), (0, 0)))
        z2 = jnp.pad(z2, ((0, pad), (0, 0)))
        mask2 = jnp.pad(mask2, ((0, pad), (0, 0)))       # mask=0 on padded rows -> out=0

    # --- cast matmul weights (biases / elementwise stay f32) ---
    wix_c = wi_x.astype(matmul_dtype)
    wiz_c = wi_z.astype(matmul_dtype)
    wr0_c = wr0.astype(matmul_dtype)
    wr1_c = wr1.astype(matmul_dtype)
    wo_c = wo.astype(matmul_dtype)

    def row_spec(feat):
        return pl.BlockSpec((tile_r, feat), lambda i: (i, 0))

    def resident(a):
        nd = a.ndim
        return pl.BlockSpec(a.shape, lambda i, _nd=nd: (0,) * _nd)

    weights = [wix_c, wiz_c, bi, wr0_c, br0, wr1_c, br1, wo_c, bo]

    out = pl.pallas_call(
        adversary_discriminator_kernel,
        out_shape=jax.ShapeDtypeStruct((r_pad, dim_latent), jnp.float32),
        grid=(num_tiles,),
        in_specs=[row_spec(dim_emb), row_spec(dim_latent), row_spec(1)]
                 + [resident(w) for w in weights],
        out_specs=row_spec(dim_latent),
        compiler_params=pltpu.CompilerParams(
            dimension_semantics=("parallel",),
        ),
    )(x2, z2, mask2, *weights)

    return out[:R].reshape(B, S, dim_latent)


def init_params(key, dim_emb, dim_latent):
    """Deterministic parameter init (shapes match the PyTorch module's __init__)."""
    dim_in = dim_emb + dim_latent

    def linear(k, fan_in, fan_out):
        k1, k2 = jax.random.split(k)
        bound = 1.0 / jnp.sqrt(fan_in)
        w = jax.random.uniform(k1, (fan_in, fan_out), jnp.float32, -bound, bound)
        b = jax.random.uniform(k2, (1, fan_out), jnp.float32, -bound, bound)
        return w, b

    keys = jax.random.split(key, 6)
    wi, bi = linear(keys[0], dim_in, 128)
    wd0, bd0 = linear(keys[1], 128, 128)
    wn0, bn0 = linear(keys[2], 128, 128)
    wd1, bd1 = linear(keys[3], 128, 128)
    wn1, bn1 = linear(keys[4], 128, 128)
    wo, bo = linear(keys[5], 128, dim_latent)

    wi_x = wi[:dim_emb]      # (dim_emb, 128)
    wi_z = wi[dim_emb:]      # (dim_latent, 128)
    return (wi_x, wi_z, bi, wd0, bd0, wn0, bn0, wd1, bd1, wn1, bn1, wo, bo)


def reference_forward(x, z, mask_seq, params):
    """Pure-JAX reference (un-fused, f32) for validation."""
    (wi_x, wi_z, bi, wd0, bd0, wn0, bn0, wd1, bd1, wn1, bn1, wo, bo) = params
    net = x @ wi_x + z @ wi_z + bi
    for wd, bd, wn, bn in ((wd0, bd0, wn0, bn0), (wd1, bd1, wn1, bn1)):
        dnet = net @ wd + bd
        net = net + (dnet @ wn + bn)
        net = jnp.where(net > 0, net, jnp.exp(net) - 1.0)
    net = net @ wo + bo
    net = net + 0.5 * jnp.square(z)
    return net * mask_seq[:, :-1].astype(jnp.float32)[:, :, None]


if __name__ == "__main__":
    # Small, module-consistent shapes:
    # dim_concept=8, dim_question=16, dim_correct=8 -> dim_emb=32; dim_latent=16
    B, S = 2, 8
    dim_concept, dim_question, dim_correct = 8, 16, 8
    dim_emb = dim_concept + dim_question + dim_correct
    dim_latent = 16

    key = jax.random.PRNGKey(0)
    kx, kz, km, kp = jax.random.split(key, 4)
    x = jax.random.normal(kx, (B, S, dim_emb), jnp.float32)
    z = jax.random.normal(kz, (B, S, dim_latent), jnp.float32)
    mask_seq = (jax.random.uniform(km, (B, S + 1)) > 0.3).astype(jnp.int32)

    params = init_params(kp, dim_emb, dim_latent)
    ref = reference_forward(x, z, mask_seq, params)

    # f32-matmul path: must match the reference tightly (validates tiling + folds).
    out_f32 = adversary_discriminator(x, z, mask_seq, params, matmul_dtype=jnp.float32)
    out_f32 = jax.block_until_ready(out_f32)
    assert out_f32.shape == (B, S, dim_latent)
    assert jnp.allclose(out_f32, ref, atol=1e-4, rtol=1e-4), "f32 kernel mismatch vs reference"

    # Default bf16-matmul path (MXU fast path): looser tolerance for bf16 operand rounding.
    out_bf16 = adversary_discriminator(x, z, mask_seq, params)
    out_bf16 = jax.block_until_ready(out_bf16)
    assert out_bf16.shape == (B, S, dim_latent)
    assert jnp.allclose(out_bf16, ref, atol=5e-2, rtol=5e-2), "bf16 kernel mismatch vs reference"

    print("KERNEL_OK")
</pallas_src>

<mosaic_0001>
module attributes {stable_mosaic.version = 11 : i64} {
  func.func @adversary_discriminator_kernel(%arg0: i32, %arg1: memref<16x32xf32, #tpu.memory_space<vmem>>, %arg2: memref<16x16xf32, #tpu.memory_space<vmem>>, %arg3: memref<16x1xf32, #tpu.memory_space<vmem>>, %arg4: memref<32x128xf32, #tpu.memory_space<vmem>>, %arg5: memref<16x128xf32, #tpu.memory_space<vmem>>, %arg6: memref<1x128xf32, #tpu.memory_space<vmem>>, %arg7: memref<128x128xf32, #tpu.memory_space<vmem>>, %arg8: memref<1x128xf32, #tpu.memory_space<vmem>>, %arg9: memref<128x128xf32, #tpu.memory_space<vmem>>, %arg10: memref<1x128xf32, #tpu.memory_space<vmem>>, %arg11: memref<128x16xf32, #tpu.memory_space<vmem>>, %arg12: memref<1x16xf32, #tpu.memory_space<vmem>>, %arg13: memref<16x16xf32, #tpu.memory_space<vmem>>) attributes {dimension_semantics = [#tpu.dimension_semantics<parallel>], iteration_bounds = array<i64: 1>, scalar_prefetch = 0 : i64, scratch_operands = 0 : i64, tpu.core_type = #tpu.core_type<tc>, window_params = [{transform_indices = @transform_0, window_bounds = array<i64: 16, 32>}, {transform_indices = @transform_1, window_bounds = array<i64: 16, 16>}, {transform_indices = @transform_2, window_bounds = array<i64: 16, 1>}, {pipeline_mode = #tpu.pipeline_mode<synchronous>, transform_indices = @transform_3, window_bounds = array<i64: 32, 128>}, {pipeline_mode = #tpu.pipeline_mode<synchronous>, transform_indices = @transform_4, window_bounds = array<i64: 16, 128>}, {pipeline_mode = #tpu.pipeline_mode<synchronous>, transform_indices = @transform_5, window_bounds = array<i64: 1, 128>}, {pipeline_mode = #tpu.pipeline_mode<synchronous>, transform_indices = @transform_6, window_bounds = array<i64: 128, 128>}, {pipeline_mode = #tpu.pipeline_mode<synchronous>, transform_indices = @transform_7, window_bounds = array<i64: 1, 128>}, {pipeline_mode = #tpu.pipeline_mode<synchronous>, transform_indices = @transform_8, window_bounds = array<i64: 128, 128>}, {pipeline_mode = #tpu.pipeline_mode<synchronous>, transform_indices = @transform_9, window_bounds = array<i64: 1, 128>}, {pipeline_mode = #tpu.pipeline_mode<synchronous>, transform_indices = @transform_10, window_bounds = array<i64: 128, 16>}, {pipeline_mode = #tpu.pipeline_mode<synchronous>, transform_indices = @transform_11, window_bounds = array<i64: 1, 16>}, {transform_indices = @transform_12, window_bounds = array<i64: 16, 16>}]} {
    %c0 = arith.constant 0 : index
    %c0_0 = arith.constant 0 : index
    %0 = vector.load %arg2[%c0, %c0_0] : memref<16x16xf32, #tpu.memory_space<vmem>>, vector<16x16xf32>
    %c0_1 = arith.constant 0 : index
    %c0_2 = arith.constant 0 : index
    %1 = vector.load %arg3[%c0_1, %c0_2] : memref<16x1xf32, #tpu.memory_space<vmem>>, vector<16x1xf32>
    %c0_3 = arith.constant 0 : index
    %c0_4 = arith.constant 0 : index
    %2 = vector.load %arg1[%c0_3, %c0_4] : memref<16x32xf32, #tpu.memory_space<vmem>>, vector<16x32xf32>
    %c0_5 = arith.constant 0 : index
    %c0_6 = arith.constant 0 : index
    %3 = vector.load %arg4[%c0_5, %c0_6] : memref<32x128xf32, #tpu.memory_space<vmem>>, vector<32x128xf32>
    %cst = arith.constant dense<0.000000e+00> : vector<16x128xf32>
    %4 = tpu.matmul %2, %3, %cst {dimension_numbers = #tpu.dot_dimension_numbers<[1], [0], [0], [1], [0, 0, 1, 1], [], []>} : vector<16x32xf32>, vector<32x128xf32>, vector<16x128xf32> -> vector<16x128xf32>
    %c0_7 = arith.constant 0 : index
    %c0_8 = arith.constant 0 : index
    %5 = vector.load %arg5[%c0_7, %c0_8] : memref<16x128xf32, #tpu.memory_space<vmem>>, vector<16x128xf32>
    %cst_9 = arith.constant dense<0.000000e+00> : vector<16x128xf32>
    %6 = tpu.matmul %0, %5, %cst_9 {dimension_numbers = #tpu.dot_dimension_numbers<[1], [0], [0], [1], [0, 0, 1, 1], [], []>} : vector<16x16xf32>, vector<16x128xf32>, vector<16x128xf32> -> vector<16x128xf32>
    %7 = arith.addf %4, %6 : vector<16x128xf32>
    %c0_10 = arith.constant 0 : index
    %c0_11 = arith.constant 0 : index
    %8 = vector.load %arg6[%c0_10, %c0_11] : memref<1x128xf32, #tpu.memory_space<vmem>>, vector<1x128xf32>
    %9 = vector.broadcast %8 : vector<1x128xf32> to vector<16x128xf32>
    %10 = arith.addf %7, %9 : vector<16x128xf32>
    %c0_12 = arith.constant 0 : index
    %c0_13 = arith.constant 0 : index
    %11 = vector.load %arg7[%c0_12, %c0_13] : memref<128x128xf32, #tpu.memory_space<vmem>>, vector<128x128xf32>
    %cst_14 = arith.constant dense<0.000000e+00> : vector<16x128xf32>
    %12 = tpu.matmul %10, %11, %cst_14 {dimension_numbers = #tpu.dot_dimension_numbers<[1], [0], [0], [1], [0, 0, 1, 1], [], []>} : vector<16x128xf32>, vector<128x128xf32>, vector<16x128xf32> -> vector<16x128xf32>
    %13 = arith.addf %10, %12 : vector<16x128xf32>
    %c0_15 = arith.constant 0 : index
    %c0_16 = arith.constant 0 : index
    %14 = vector.load %arg8[%c0_15, %c0_16] : memref<1x128xf32, #tpu.memory_space<vmem>>, vector<1x128xf32>
    %15 = vector.broadcast %14 : vector<1x128xf32> to vector<16x128xf32>
    %16 = arith.addf %13, %15 : vector<16x128xf32>
    %cst_17 = arith.constant 0.000000e+00 : f32
    %17 = vector.broadcast %cst_17 : f32 to vector<16x128xf32>
    %18 = arith.cmpf ogt, %16, %17 : vector<16x128xf32>
    %19 = math.exp %16 : vector<16x128xf32>
    %cst_18 = arith.constant 1.000000e+00 : f32
    %20 = vector.broadcast %cst_18 : f32 to vector<16x128xf32>
    %21 = arith.subf %19, %20 : vector<16x128xf32>
    %22 = arith.select %18, %16, %21 : vector<16x128xi1>, vector<16x128xf32>
    %c0_19 = arith.constant 0 : index
    %c0_20 = arith.constant 0 : index
    %23 = vector.load %arg9[%c0_19, %c0_20] : memref<128x128xf32, #tpu.memory_space<vmem>>, vector<128x128xf32>
    %cst_21 = arith.constant dense<0.000000e+00> : vector<16x128xf32>
    %24 = tpu.matmul %22, %23, %cst_21 {dimension_numbers = #tpu.dot_dimension_numbers<[1], [0], [0], [1], [0, 0, 1, 1], [], []>} : vector<16x128xf32>, vector<128x128xf32>, vector<16x128xf32> -> vector<16x128xf32>
    %25 = arith.addf %22, %24 : vector<16x128xf32>
    %c0_22 = arith.constant 0 : index
    %c0_23 = arith.constant 0 : index
    %26 = vector.load %arg10[%c0_22, %c0_23] : memref<1x128xf32, #tpu.memory_space<vmem>>, vector<1x128xf32>
    %27 = vector.broadcast %26 : vector<1x128xf32> to vector<16x128xf32>
    %28 = arith.addf %25, %27 : vector<16x128xf32>
    %cst_24 = arith.constant 0.000000e+00 : f32
    %29 = vector.broadcast %cst_24 : f32 to vector<16x128xf32>
    %30 = arith.cmpf ogt, %28, %29 : vector<16x128xf32>
    %31 = math.exp %28 : vector<16x128xf32>
    %cst_25 = arith.constant 1.000000e+00 : f32
    %32 = vector.broadcast %cst_25 : f32 to vector<16x128xf32>
    %33 = arith.subf %31, %32 : vector<16x128xf32>
    %34 = arith.select %30, %28, %33 : vector<16x128xi1>, vector<16x128xf32>
    %c0_26 = arith.constant 0 : index
    %c0_27 = arith.constant 0 : index
    %35 = vector.load %arg11[%c0_26, %c0_27] : memref<128x16xf32, #tpu.memory_space<vmem>>, vector<128x16xf32>
    %cst_28 = arith.constant dense<0.000000e+00> : vector<16x16xf32>
    %36 = tpu.matmul %34, %35, %cst_28 {dimension_numbers = #tpu.dot_dimension_numbers<[1], [0], [0], [1], [0, 0, 1, 1], [], []>} : vector<16x128xf32>, vector<128x16xf32>, vector<16x16xf32> -> vector<16x16xf32>
    %c0_29 = arith.constant 0 : index
    %c0_30 = arith.constant 0 : index
    %37 = vector.load %arg12[%c0_29, %c0_30] : memref<1x16xf32, #tpu.memory_space<vmem>>, vector<1x16xf32>
    %38 = vector.broadcast %37 : vector<1x16xf32> to vector<16x16xf32>
    %39 = arith.addf %36, %38 : vector<16x16xf32>
    %40 = arith.mulf %0, %0 : vector<16x16xf32>
    %cst_31 = arith.constant 5.000000e-01 : f32
    %41 = vector.broadcast %cst_31 : f32 to vector<16x16xf32>
    %42 = arith.mulf %41, %40 : vector<16x16xf32>
    %43 = arith.addf %39, %42 : vector<16x16xf32>
    %44 = vector.broadcast %1 : vector<16x1xf32> to vector<16x16xf32>
    %45 = arith.mulf %43, %44 : vector<16x16xf32>
    %c0_32 = arith.constant 0 : index
    %c0_33 = arith.constant 0 : index
    %46 = vector.load %arg13[%c0_32, %c0_33] : memref<16x16xf32, #tpu.memory_space<vmem>>, vector<16x16xf32>
    tpu.vector_store %arg13[%c0_32, %c0_33], %45 {strides = array<i32>} : memref<16x16xf32, #tpu.memory_space<vmem>>, vector<16x16xf32>,
    return
  }
  func.func @transform_0(%arg0: i32) -> (i32, i32) {
    %c0_i32 = arith.constant 0 : i32
    %c0_i32_0 = arith.constant 0 : i32
    return %arg0, %c0_i32 : i32, i32
  }
  func.func @transform_1(%arg0: i32) -> (i32, i32) {
    %c0_i32 = arith.constant 0 : i32
    %c0_i32_0 = arith.constant 0 : i32
    return %arg0, %c0_i32 : i32, i32
  }
  func.func @transform_2(%arg0: i32) -> (i32, i32) {
    %c0_i32 = arith.constant 0 : i32
    %c0_i32_0 = arith.constant 0 : i32
    return %arg0, %c0_i32 : i32, i32
  }
  func.func @transform_3(%arg0: i32) -> (i32, i32) {
    %c0_i32 = arith.constant 0 : i32
    %c0_i32_0 = arith.constant 0 : i32
    %c0_i32_1 = arith.constant 0 : i32
    return %c0_i32, %c0_i32_0 : i32, i32
  }
  func.func @transform_4(%arg0: i32) -> (i32, i32) {
    %c0_i32 = arith.constant 0 : i32
    %c0_i32_0 = arith.constant 0 : i32
    %c0_i32_1 = arith.constant 0 : i32
    return %c0_i32, %c0_i32_0 : i32, i32
  }
  func.func @transform_5(%arg0: i32) -> (i32, i32) {
    %c0_i32 = arith.constant 0 : i32
    %c0_i32_0 = arith.constant 0 : i32
    %c0_i32_1 = arith.constant 0 : i32
    return %c0_i32, %c0_i32_0 : i32, i32
  }
  func.func @transform_6(%arg0: i32) -> (i32, i32) {
    %c0_i32 = arith.constant 0 : i32
    %c0_i32_0 = arith.constant 0 : i32
    %c0_i32_1 = arith.constant 0 : i32
    return %c0_i32, %c0_i32_0 : i32, i32
  }
  func.func @transform_7(%arg0: i32) -> (i32, i32) {
    %c0_i32 = arith.constant 0 : i32
    %c0_i32_0 = arith.constant 0 : i32
    %c0_i32_1 = arith.constant 0 : i32
    return %c0_i32, %c0_i32_0 : i32, i32
  }
  func.func @transform_8(%arg0: i32) -> (i32, i32) {
    %c0_i32 = arith.constant 0 : i32
    %c0_i32_0 = arith.constant 0 : i32
    %c0_i32_1 = arith.constant 0 : i32
    return %c0_i32, %c0_i32_0 : i32, i32
  }
  func.func @transform_9(%arg0: i32) -> (i32, i32) {
    %c0_i32 = arith.constant 0 : i32
    %c0_i32_0 = arith.constant 0 : i32
    %c0_i32_1 = arith.constant 0 : i32
    return %c0_i32, %c0_i32_0 : i32, i32
  }
  func.func @transform_10(%arg0: i32) -> (i32, i32) {
    %c0_i32 = arith.constant 0 : i32
    %c0_i32_0 = arith.constant 0 : i32
    %c0_i32_1 = arith.constant 0 : i32
    return %c0_i32, %c0_i32_0 : i32, i32
  }
  func.func @transform_11(%arg0: i32) -> (i32, i32) {
    %c0_i32 = arith.constant 0 : i32
    %c0_i32_0 = arith.constant 0 : i32
    %c0_i32_1 = arith.constant 0 : i32
    return %c0_i32, %c0_i32_0 : i32, i32
  }
  func.func @transform_12(%arg0: i32) -> (i32, i32) {
    %c0_i32 = arith.constant 0 : i32
    %c0_i32_0 = arith.constant 0 : i32
    return %arg0, %c0_i32 : i32, i32
  }
}

</mosaic_0001>

<bundles_post_ra>
// kernel: tpu_custom_call.1
= control target key start
LH: loop header
LB: loop body
LE: loop exit
PB: predicated region body
PF: predicated region fallthrough
CT: control target
= control target key end

     0   :  { %17 = vsyncpa [#allocation3], 0  ;;  %s775_s0 = inlined_call_operand.vmem [shape: f32[16,32], index: 0, kind: input, shape index: {}]   ;;  %s776_s1 = inlined_call_operand.hbm [shape: f32[16,16], index: 1, kind: input, shape index: {}]   ;;  %s777_s2 = inlined_call_operand.vmem [shape: f32[16,1], index: 2, kind: input, shape index: {}]   ;;  %s778_s3 = inlined_call_operand.hbm [shape: f32[32,128], index: 3, kind: input, shape index: {}]   ;;  %s779_s4 = inlined_call_operand.hbm [shape: f32[16,128], index: 4, kind: input, shape index: {}]   ;;  %s780_s5 = inlined_call_operand.vmem [shape: f32[1,128], index: 5, kind: input, shape index: {}]   ;;  %s781_s6 = inlined_call_operand.vmem [shape: f32[128,128], index: 6, kind: input, shape index: {}]   ;;  %s782_s7 = inlined_call_operand.vmem [shape: f32[1,128], index: 7, kind: input, shape index: {}]   ;;  %s783_s8 = inlined_call_operand.hbm [shape: f32[128,128], index: 8, kind: input, shape index: {}]   ;;  %s784_s9 = inlined_call_operand.vmem [shape: f32[1,128], index: 9, kind: input, shape index: {}]   ;;  %s785_s10 = inlined_call_operand.vmem [shape: f32[128,16], index: 10, kind: input, shape index: {}]   ;;  %s786_s11 = inlined_call_operand.vmem [shape: f32[1,16], index: 11, kind: input, shape index: {}]   ;;  %s787_s12 = inlined_call_operand.hbm [shape: f32[16,16], index: 12, kind: output, shape index: {}]  }
   0x1   :  { %18 = vsyncpa [#allocation6], 0 }
   0x2   :  { %19 = vsyncpa [#allocation9], 0 }
   0x3   :  { %20 = vsyncpa [#allocation4], 0  ;;  %s42_s23 = sshll.u32 %s778_s3, 4  ;;  %s538_s24 = smov [#allocation5]   ;;  %s43_s23 = int_to_ptr.hbm [resolvable:$true] %s42_s23 }
   0x4   :  { %s44_s25 = sshll.u32 %s538_s24, 4  ;;  %s27_s28 = sshll.u32 %s776_s1, 4  ;;  %s45_s25 = int_to_ptr.vmem [resolvable:$true] %s44_s25  ;;  %s28_s28 = int_to_ptr.hbm [resolvable:$true] %s27_s28 }
   0x5   :  { %s539_s29 = smov 128   ;;  %s540_s30 = smov 8  }
   0x6   :  { %50 = dma.hbm_to_vmem [thread:$0]  %s43_s23, 512, %s45_s25, [#allocation6], %s539_s29, %s539_s29, %s540_s30  }
   0x7   :  { %s541_s13 = smov [#allocation2]   ;;  %s55_s3 = sshll.u32 %s779_s4, 4  ;;  %s56_s3 = int_to_ptr.hbm [resolvable:$true] %s55_s3 }
   0x8   :  { %s29_s14 = sshll.u32 %s541_s13, 4  ;;  %s74_s18 = sshll.u32 %s783_s8, 4  ;;  %s30_s14 = int_to_ptr.vmem [resolvable:$true] %s29_s14  ;;  %s75_s18 = int_to_ptr.hbm [resolvable:$true] %s74_s18 }
   0x9   :  { %35 = dma.hbm_to_vmem [thread:$0]  %s28_s28, 256, %s30_s14, [#allocation3], %s539_s29, %s539_s29, %s540_s30  }
   0xa   :  { %s542_s19 = smov [#allocation7]   ;;  %s543_s21 = smov [#allocation8]  }
   0xb   :  { %s57_s20 = sshll.u32 %s542_s19, 4  ;;  %s76_s4 = sshll.u32 %s543_s21, 4  ;;  %s58_s20 = int_to_ptr.vmem [resolvable:$true] %s57_s20  ;;  %s77_s4 = int_to_ptr.vmem [resolvable:$true] %s76_s4 }
   0xc   :  { %63 = dma.hbm_to_vmem [thread:$0]  %s56_s3, 256, %s58_s20, [#allocation6], %s539_s29, %s539_s29, %s540_s30  }
   0xd   :  { %82 = dma.hbm_to_vmem [thread:$0]  %s75_s18, 2048, %s77_s4, [#allocation9], %s539_s29, %s539_s29, %s540_s30  }
   0xe   :  { %530 = dma.done.wait [#allocation3], 256  }
   0xf   :  { %531 = vsyncadd [#allocation3], 4294967040 }
  0x10   :  { %532 = dma.done.wait [#allocation6], 768  }
  0x11   :  { %533 = vsyncadd [#allocation6], 4294966528 }
  0x12   :  { %534 = dma.done.wait [#allocation9], 2048  }
  0x13   :  { %535 = vsyncadd [#allocation9], 4294965248  ;;  %v116_v0 = vld [vmem:[#allocation7 + $0x8] sm:$0xff]  ;;  %v115_v1 = vld [vmem:[#allocation7] sm:$0xff]  ;;  %vm117_vm0 = vcmask 130048   ;;  %vm147_vm1 = vcmask 261120  }
  0x14   :  { %138 = vmatpush.msra.mxu1 %v116_v0  ;;  %v635_v2 = vld [vmem:[#allocation2] sm:$0xff]  ;;  %v114_v3 = vld [vmem:[#allocation5 + $0x18] sm:$0xff]  ;;  %v198_v4 = vld [vmem:[%s781_s6 + $0x78] sm:$0xff] }
  0x15   :  { %v197_v5 = vld [vmem:[%s781_s6 + $0x70] sm:$0xff]  ;;  %v113_v6 = vld [vmem:[#allocation5 + $0x10] sm:$0xff]  ;;  %199 = vmatpush.msra.mxu2 %v198_v4  ;;  %v196_v7 = vld [vmem:[%s781_s6 + $0x68] sm:$0xff] }
  0x16   :  { %139 = vmatpush.msra.mxu1 %v115_v1  ;;  %v112_v8 = vld [vmem:[#allocation5 + $0x8] sm:$0xff]  ;;  %v195_v9 = vld [vmem:[%s781_s6 + $0x60] sm:$0xff]  ;;  %v111_v10 = vld [vmem:[#allocation5] sm:$0xff] }
  0x17   :  { %381 = vmatmul.msk.f32.vlgmr.msra.gmra.mxu1 %vm117_vm0, %v635_v2  ;;  %200 = vmatpush.msra.mxu2 %v197_v5  ;;  %v651_v11 = vld [vmem:[#allocation2 + $0x8] sm:$0xff]  ;;  %v194_v12 = vld [vmem:[%s781_s6 + $0x58] sm:$0xff]  ;;  %v109_v13 = vld [vmem:[%s775_s0] sm:$0xff] }
  0x18   :  { %166 = vmatpush.msrb.mxu1 %v114_v3  ;;  %v110_v14 = vld [vmem:[%s775_s0 + $0x8] sm:$0xff]  ;;  %v193_v15 = vld [vmem:[%s781_s6 + $0x50] sm:$0xff]  ;;  %v191_v17 = vld [vmem:[%s781_s6 + $0x40] sm:$0xff] }
  0x19   :  { %201 = vmatpush.msra.mxu2 %v196_v7  ;;  %v192_v16 = vld [vmem:[%s781_s6 + $0x48] sm:$0xff]  ;;  %v190_v18 = vld [vmem:[%s781_s6 + $0x38] sm:$0xff]  ;;  %v189_v19 = vld [vmem:[%s781_s6 + $0x30] sm:$0xff] }
  0x1a   :  { %167 = vmatpush.msrb.mxu1 %v113_v6  ;;  %v188_v20 = vld [vmem:[%s781_s6 + $0x28] sm:$0xff]  ;;  %v187_v21 = vld [vmem:[%s781_s6 + $0x20] sm:$0xff]  ;;  %v186_v22 = vld [vmem:[%s781_s6 + $0x18] sm:$0xff] }
  0x1b   :  { %202 = vmatpush.msra.mxu2 %v195_v9  ;;  %v185_v23 = vld [vmem:[%s781_s6 + $0x10] sm:$0xff]  ;;  %v184_v24 = vld [vmem:[%s781_s6 + $0x8] sm:$0xff]  ;;  %v183_v25 = vld [vmem:[%s781_s6] sm:$0xff] }
  0x1c   :  { %168 = vmatpush.msrb.mxu1 %v112_v8  ;;  %v255_v26 = vld [vmem:[#allocation8 + $0x78] sm:$0xff]  ;;  %v254_v27 = vld [vmem:[#allocation8 + $0x70] sm:$0xff]  ;;  %v253_v28 = vld [vmem:[#allocation8 + $0x68] sm:$0xff] }
  0x1d   :  { %203 = vmatpush.msra.mxu2 %v194_v12  ;;  %256 = vmatpush.msra.mxu3 %v255_v26  ;;  %v252_v30 = vld [vmem:[#allocation8 + $0x60] sm:$0xff]  ;;  %v251_v31 = vld [vmem:[#allocation8 + $0x58] sm:$0xff]  ;;  %v250_v32 = vld [vmem:[#allocation8 + $0x50] sm:$0xff] }
  0x1e   :  { %169 = vmatpush.msrb.mxu1 %v111_v10  ;;  %v249_v33 = vld [vmem:[#allocation8 + $0x48] sm:$0xff]  ;;  %v398_v35 = vld [vmem:[%s780_s5] ss:$0 sm:$0xff]  ;;  %v247_v43 = vld [vmem:[#allocation8 + $0x38] sm:$0xff] }
  0x1f   :  { %382 = vmatmul.msk.f32.gmra.mxu1 %vm117_vm0, %v651_v11  ;;  %204 = vmatpush.msra.mxu2 %v193_v15  ;;  %v248_v42 = vld [vmem:[#allocation8 + $0x40] sm:$0xff]  ;;  %v246_v44 = vld [vmem:[#allocation8 + $0x30] sm:$0xff]  ;;  %v245_v45 = vld [vmem:[#allocation8 + $0x28] sm:$0xff] }
  0x20   :  { %257 = vmatpush.msra.mxu3 %v254_v27  ;;  %v244_v46 = vld [vmem:[#allocation8 + $0x20] sm:$0xff]  ;;  %v243_v47 = vld [vmem:[#allocation8 + $0x18] sm:$0xff]  ;;  %v242_v48 = vld [vmem:[#allocation8 + $0x10] sm:$0xff] }
  0x21   :  { %205 = vmatpush.msra.mxu2 %v192_v16  ;;  %v241_v49 = vld [vmem:[#allocation8 + $0x8] sm:$0xff]  ;;  %v240_v50 = vld [vmem:[#allocation8] sm:$0xff]  ;;  %v312_v51 = vld [vmem:[%s785_s10 + $0x78] sm:$0xff] }
  0x22   :  { %258 = vmatpush.msra.mxu3 %v253_v28  ;;  %v311_v52 = vld [vmem:[%s785_s10 + $0x70] sm:$0xff]  ;;  %317 = vmatpush.msra.mxu0 %v312_v51  ;;  %v310_v53 = vld [vmem:[%s785_s10 + $0x68] sm:$0xff]  ;;  %v309_v54 = vld [vmem:[%s785_s10 + $0x60] sm:$0xff] }
  0x23   :  { %206 = vmatpush.msra.mxu2 %v191_v17  ;;  %v399_v55 = vld [vmem:[%s782_s7] ss:$0 sm:$0xff]  ;;  %v308_v56 = vld [vmem:[%s785_s10 + $0x58] sm:$0xff]  ;;  %v307_v59 = vld [vmem:[%s785_s10 + $0x50] sm:$0xff] }
  0x24   :  { %259 = vmatpush.msra.mxu3 %v252_v30  ;;  %318 = vmatpush.msra.mxu0 %v311_v52  ;;  %v306_v61 = vld [vmem:[%s785_s10 + $0x48] sm:$0xff]  ;;  %v305_v10 = vld [vmem:[%s785_s10 + $0x40] sm:$0xff]  ;;  %v304_v12 = vld [vmem:[%s785_s10 + $0x38] sm:$0xff] }
  0x25   :  { %207 = vmatpush.msra.mxu2 %v190_v18  ;;  %v301_v15 = vld [vmem:[%s785_s10 + $0x20] sm:$0xff]  ;;  %v300_v16 = vld [vmem:[%s785_s10 + $0x18] sm:$0xff]  ;;  %v299_v17 = vld [vmem:[%s785_s10 + $0x10] sm:$0xff] }
  0x26   :  { %260 = vmatpush.msra.mxu3 %v251_v31  ;;  %319 = vmatpush.msra.mxu0 %v310_v53  ;;  %v298_v18 = vld [vmem:[%s785_s10 + $0x8] sm:$0xff] }
  0x27   :  { %383 = vmatmul.msk.f32.vlgmr.msrb.gmra.mxu1 %vm147_vm1, %v109_v13  ;;  %208 = vmatpush.msra.mxu2 %v189_v19  ;;  %v303_v13 = vld [vmem:[%s785_s10 + $0x30] sm:$0xff]  ;;  %v297_v19 = vld [vmem:[%s785_s10] sm:$0xff] }
  0x28   :  { %261 = vmatpush.msra.mxu3 %v250_v32  ;;  %320 = vmatpush.msra.mxu0 %v309_v54 }
  0x29   :  { %209 = vmatpush.msra.mxu2 %v188_v20  ;;  %v107_v20 = vld [vmem:[%s777_s2] sm:$0xff] }
  0x2a   :  { %262 = vmatpush.msra.mxu3 %v249_v33  ;;  %321 = vmatpush.msra.mxu0 %v308_v56 }
  0x2b   :  { %210 = vmatpush.msra.mxu2 %v187_v21  ;;  %v544_v21 = vmov 0  }
  0x2c   :  { %263 = vmatpush.msra.mxu3 %v248_v42  ;;  %322 = vmatpush.msra.mxu0 %v307_v59 }
  0x2d   :  { %211 = vmatpush.msra.mxu2 %v186_v22  ;;  %397 = vset.pattern.permute.xlu0 %v544_v21  ;;  %v108_v22 = vld [vmem:[%s777_s2 + $0x8] sm:$0xff] }
  0x2e   :  { %264 = vmatpush.msra.mxu3 %v247_v43  ;;  %323 = vmatpush.msra.mxu0 %v306_v61 }
  0x2f   :  { %384 = vmatmul.msk.f32.gmra.mxu1 %vm147_vm1, %v110_v14  ;;  %212 = vmatpush.msra.mxu2 %v185_v23  ;;  %v302_v14 = vld [vmem:[%s785_s10 + $0x28] sm:$0xff]  ;;  %v400_v23 = vld [vmem:[%s784_s9] ss:$0 sm:$0xff]  ;;  %s545_s10 = smov [#allocation10]  }
  0x30   :  { %265 = vmatpush.msra.mxu3 %v246_v44  ;;  %324 = vmatpush.msra.mxu0 %v305_v10  ;;  %v341_v44 = vmul.f32 %v651_v11, %v651_v11  ;;  %s364_s7 = sshll.u32 %s545_s10, 4  ;;  %s365_s7 = int_to_ptr.vmem [resolvable:$true] %s364_s7 }
  0x31   :  { %213 = vmatpush.msra.mxu2 %v184_v24  ;;  %348 = vperm.xlu0 %397, %v107_v20  }
  0x32   :  { %266 = vmatpush.msra.mxu3 %v245_v45  ;;  %325 = vmatpush.msra.mxu0 %v304_v12 }
  0x33   :  { %214 = vmatpush.msra.mxu2 %v183_v25 }
  0x34   :  { %267 = vmatpush.msra.mxu3 %v244_v46  ;;  %326 = vmatpush.msra.mxu0 %v303_v13 }
  0x36   :  { %268 = vmatpush.msra.mxu3 %v243_v47  ;;  %327 = vmatpush.msra.mxu0 %v302_v14  ;;  %v343_v47 = vmul.f32 0.5, %v341_v44 }
  0x38   :  { %269 = vmatpush.msra.mxu3 %v242_v48  ;;  %328 = vmatpush.msra.mxu0 %v301_v15 }
  0x39   :  { %353 = vperm.xlu0 %397, %v108_v22  }
  0x3a   :  { %270 = vmatpush.msra.mxu3 %v241_v49  ;;  %329 = vmatpush.msra.mxu0 %v300_v16 }
  0x3c   :  { %271 = vmatpush.msra.mxu3 %v240_v50  ;;  %330 = vmatpush.msra.mxu0 %v299_v17 }
  0x3e   :  { %331 = vmatpush.msra.mxu0 %v298_v18 }
  0x40   :  { %332 = vmatpush.msra.mxu0 %v297_v19 }
  0x94   :  { %v141_v29 = vpop.f32.mrf.mxu1 }
  0x9c   :  { %v144_v34 = vpop.f32.mrf.mxu1 }
  0xa3   :  { %v349_v43 = vpop.permute.xlu0 %348 }
  0xa4   :  { %v171_v36 = vpop.f32.mrf.mxu1 }
  0xa5   :  { %v172_v37 = vadd.f32 %v171_v36, %v141_v29 }
  0xa7   :  { %v181_v38 = vadd.f32 %v398_v35, %v172_v37 }
  0xa9   :  { %215 = vmatmul.f32.vlgmr.msra.gmra.mxu2 %v181_v38 }
  0xab   :  { %v354_v50 = vpop.permute.xlu0 %353 }
  0xac   :  { %v174_v39 = vpop.f32.mrf.mxu1 }
  0xad   :  { %v175_v40 = vadd.f32 %v174_v39, %v144_v34  ;;  %v401_v39 = vld [vmem:[%s786_s11] ss:$0 sm:$0xff]  ;;  %s366_s11 = sshll.u32 %s787_s12, 4  ;;  %s367_s11 = int_to_ptr.hbm [resolvable:$true] %s366_s11 }
  0xaf   :  { %v182_v41 = vadd.f32 %v398_v35, %v175_v40 }
  0xb1   :  { %218 = vmatmul.f32.gmra.mxu2 %v182_v41 }
 0x12c   :  { %v216_v57 = vpop.f32.mrf.mxu2 }
 0x12d   :  { %v222_v58 = vadd.f32 %v216_v57, %v181_v38  ;;  %v340_v38 = vmul.f32 %v635_v2, %v635_v2 }
 0x12f   :  { %v228_v60 = vadd.f32 %v399_v55, %v222_v58  ;;  %v342_v40 = vmul.f32 0.5, %v340_v38 }
 0x131   :  { %v232_v62 = vmul.f32 1.442695, %v228_v60  ;;  %vm230_vm2 = vcmp.gt.f32.partialorder %v228_v60, 0.0 }
 0x133   :  { %402 = vpow2.f32 %v232_v62 }
 0x134   :  { %v219_v63 = vpop.f32.mrf.mxu2 }
 0x135   :  { %v223_v0 = vadd.f32 %v219_v63, %v182_v41 }
 0x137   :  { %v229_v1 = vadd.f32 %v399_v55, %v223_v0 }
 0x139   :  { %v403_v3 = vpop.eup %402  ;;  %v234_v4 = vmul.f32 1.442695, %v229_v1  ;;  %vm231_vm3 = vcmp.gt.f32.partialorder %v229_v1, 0.0 }
 0x13a   :  { %v385_v5 = vadd.f32 -1.0, %v403_v3 }
 0x13b   :  { %404 = vpow2.f32 %v234_v4 }
 0x13c   :  { %v238_v6 = vsel %vm230_vm2, %v228_v60, %v385_v5 }
 0x13d   :  { %272 = vmatmul.f32.vlgmr.msra.gmra.mxu3 %v238_v6 }
 0x141   :  { %v405_v7 = vpop.eup %404 }
 0x142   :  { %v386_v8 = vadd.f32 -1.0, %v405_v7 }
 0x144   :  { %v239_v9 = vsel %vm231_vm3, %v229_v1, %v386_v8 }
 0x145   :  { %275 = vmatmul.f32.gmra.mxu3 %v239_v9 }
 0x1c0   :  { %v273_v24 = vpop.f32.mrf.mxu3 }
 0x1c1   :  { %v279_v25 = vadd.f32 %v273_v24, %v238_v6 }
 0x1c3   :  { %v285_v26 = vadd.f32 %v400_v23, %v279_v25 }
 0x1c5   :  { %v289_v27 = vmul.f32 1.442695, %v285_v26  ;;  %vm287_vm4 = vcmp.gt.f32.partialorder %v285_v26, 0.0 }
 0x1c7   :  { %406 = vpow2.f32 %v289_v27 }
 0x1c8   :  { %v276_v28 = vpop.f32.mrf.mxu3 }
 0x1c9   :  { %v280_v29 = vadd.f32 %v276_v28, %v239_v9 }
 0x1cb   :  { %v286_v30 = vadd.f32 %v400_v23, %v280_v29 }
 0x1cd   :  { %v407_v31 = vpop.eup %406  ;;  %v291_v32 = vmul.f32 1.442695, %v286_v30  ;;  %vm288_vm5 = vcmp.gt.f32.partialorder %v286_v30, 0.0 }
 0x1ce   :  { %v387_v33 = vadd.f32 -1.0, %v407_v31 }
 0x1cf   :  { %408 = vpow2.f32 %v291_v32 }
 0x1d0   :  { %v295_v34 = vsel %vm287_vm4, %v285_v26, %v387_v33 }
 0x1d1   :  { %333 = vmatmul.f32.vlgmr.msra.gmra.mxu0 %v295_v34 }
 0x1d5   :  { %v409_v35 = vpop.eup %408 }
 0x1d6   :  { %v388_v36 = vadd.f32 -1.0, %v409_v35 }
 0x1d8   :  { %v296_v37 = vsel %vm288_vm5, %v286_v30, %v388_v36 }
 0x1d9   :  { %336 = vmatmul.f32.gmra.mxu0 %v296_v37 }
 0x24e   :  { %v334_v41 = vpop.f32.mrf.mxu0 }
 0x24f   :  { %v335_v42 = vadd.f32 %v401_v39, %v334_v41 }
 0x251   :  { %v344_v45 = vadd.f32 %v342_v40, %v335_v42 }
 0x253   :  { %v356_v46 = vmul.f32 %v349_v43, %v344_v45 }
 0x255   :  { %358 = vst.msk [vmem:[#allocation10] sm:$0xff] %vm117_vm0, %v356_v46 }
 0x256   :  { %v337_v48 = vpop.f32.mrf.mxu0 }
 0x257   :  { %v338_v49 = vadd.f32 %v401_v39, %v337_v48 }
 0x259   :  { %v345_v2 = vadd.f32 %v343_v47, %v338_v49 }
 0x25b   :  { %v357_v51 = vmul.f32 %v354_v50, %v345_v2 }
 0x25d   :  { %359 = vst.msk [vmem:[#allocation10 + $0x8] sm:$0xff] %vm117_vm0, %v357_v51 }
 0x25e   :  { %372 = dma.vmem_to_hbm [thread:$0]  %s365_s7, 256, %s367_s11, [#allocation4], %s539_s29, %s539_s29, %s540_s30  }
 0x25f   :  { %536 = dma.done.wait [#allocation4], 256  }
 0x260   :  { %537 = vsyncadd [#allocation4], 4294967040 }
 0x261   :  { %377 = vsyncpa [#allocation3], 1 }
 0x262   :  { %378 = vsyncpa [#allocation6], 1 }
 0x263   :  { %379 = vsyncpa [#allocation9], 1 }
 0x264   :  { %380 = vsyncpa [#allocation4], 1 }

</bundles_post_ra>
